<compile_context>
chip_gen: v7x
topology: tpu7x:2x2x1
jax: 0.10.0
libtpu: 0.0.40
codegen_flags: <defaults>
</compile_context>

<pallas_src>
import functools

import jax
import jax.numpy as jnp
from jax.experimental import pallas as pl
from jax.experimental.pallas import tpu as pltpu


def _cdiv(a, b):
    return -(-a // b)


def _round_up(x, m):
    return ((x + m - 1) // m) * m


def _ffn_kernel(x_ref, w1t_ref, b1_ref, w2t_ref, b2_ref, o_ref, acc_ref):
    # Grid: (token tiles, intermediate-dim chunks). k is the reduction axis.
    k = pl.program_id(1)

    @pl.when(k == 0)
    def _init():
        acc_ref[...] = jnp.zeros_like(acc_ref)

    x = x_ref[...]

    # conv1 chunk (pointwise) + bias + ReLU — f32 accumulation on the MXU.
    h = jnp.dot(x, w1t_ref[...], preferred_element_type=jnp.float32) + b1_ref[...]
    h = jnp.maximum(h, 0.0)

    # conv2 chunk: accumulate partial Y over intermediate-dim chunks.
    acc_ref[...] += jnp.dot(h.astype(x.dtype), w2t_ref[...],
                            preferred_element_type=jnp.float32)

    @pl.when(k == pl.num_programs(1) - 1)
    def _finalize():
        o_ref[...] = (acc_ref[...] + b2_ref[...]
                      + x.astype(jnp.float32)).astype(o_ref.dtype)


def _maybe_single_buffered(block_shape, index_map):
    """Single-buffer a grid-invariant operand when the API supports it."""
    try:
        return pl.BlockSpec(block_shape, index_map, pipeline_mode=pl.Buffered(1))
    except Exception:  # older jax without pipeline_mode / Buffered
        return pl.BlockSpec(block_shape, index_map)


@functools.partial(jax.jit, static_argnames=("tile_bytes",))
def pointwise_feedforward(x, w1, b1, w2, b2, *, tile_bytes=4 * 1024 * 1024):
    """x: (B, L, H); w1, w2: (H_out, H_in) Conv1d k=1 weights; b1, b2: (H,)."""
    B, L, H = x.shape
    N = B * L
    el_bytes = jnp.dtype(x.dtype).itemsize

    # ---- Token tiling --------------------------------------------------------
    # Large tiles (amortize per-step overhead), >= 2 tiles when there is enough
    # work (both v7x TensorCores busy), balanced so no tile is nearly empty.
    tm_max = max(256, min(4096, tile_bytes // max(1, H * el_bytes)))
    min_tiles = 2 if N >= 16 else 1
    t0 = max(min_tiles, _cdiv(N, tm_max))
    # Prefer a tile count that divides N with 8-aligned tiles -> zero padding
    # and no pad/slice HBM round trips.
    T = t0
    for cand in range(t0, t0 + 17):
        if N % cand == 0 and (N // cand) % 8 == 0:
            T = cand
            break
    TM = _round_up(_cdiv(N, T), 8)
    Np = T * TM

    # ---- Intermediate-dim chunking (large, 128-aligned H only) ---------------
    # Bounds resident weight-block VMEM on every generation (esp. v7x 64 MiB).
    if H % 128 == 0:
        budget = 8 * 1024 * 1024  # per weight block, per buffer
        TK = max(128, min(H, (budget // max(1, H * el_bytes)) // 128 * 128))
        while H % TK != 0:
            TK -= 128
    else:
        TK = H
    KT = H // TK

    # ---- Operand prep: no lane padding; minimal token padding only ----------
    xf = x.reshape(N, H)
    if Np != N:
        xf = jnp.pad(xf, ((0, Np - N), (0, 0)))
    w1t = w1.T.astype(x.dtype)              # (H_in, H_mid)
    w2t = w2.T.astype(x.dtype)              # (H_mid, H_out)
    b1p = b1.astype(jnp.float32).reshape(1, H)
    b2p = b2.astype(jnp.float32).reshape(1, H)

    # ---- VMEM limit: ~75% of this chip's actual capacity ---------------------
    try:
        vmem_cap = pltpu.get_tpu_info().vmem_capacity_bytes
    except Exception:
        vmem_cap = 64 * 1024 * 1024
    vmem_limit = int(vmem_cap * 3 // 4)

    # Weights/biases are grid-invariant when KT == 1 -> single-buffer them.
    const_spec = _maybe_single_buffered if KT == 1 else pl.BlockSpec

    flops = 4 * Np * H * H                          # two (Np,H) x (H,H) matmuls
    bytes_accessed = (2 * Np * H + 2 * H * H) * el_bytes + 2 * H * 4

    out = pl.pallas_call(
        _ffn_kernel,
        out_shape=jax.ShapeDtypeStruct((Np, H), x.dtype),
        grid_spec=pltpu.PrefetchScalarGridSpec(
            num_scalar_prefetch=0,
            grid=(T, KT),
            in_specs=[
                pl.BlockSpec((TM, H), lambda i, k: (i, 0)),           # x tile
                const_spec((H, TK), lambda i, k: (0, k)),             # W1^T chunk
                const_spec((1, TK), lambda i, k: (0, k)),             # b1 chunk
                const_spec((TK, H), lambda i, k: (k, 0)),             # W2^T chunk
                _maybe_single_buffered((1, H), lambda i, k: (0, 0)),  # b2
            ],
            out_specs=pl.BlockSpec((TM, H), lambda i, k: (i, 0)),
            scratch_shapes=[pltpu.VMEM((TM, H), jnp.float32)],
        ),
        compiler_params=pltpu.CompilerParams(
            dimension_semantics=("parallel", "arbitrary"),
            vmem_limit_bytes=vmem_limit,
        ),
        cost_estimate=pl.CostEstimate(
            flops=int(flops), transcendentals=0,
            bytes_accessed=int(bytes_accessed)),
    )(xf, w1t, b1p, w2t, b2p)

    if Np != N:
        out = out[:N]
    return out.reshape(B, L, H)


if __name__ == "__main__":
    # Small deterministic setup consistent with the module: hidden_units = 32.
    B, L, H = 2, 8, 32
    key = jax.random.PRNGKey(0)
    kx, k1, k2, k3, k4 = jax.random.split(key, 5)

    x = jax.random.normal(kx, (B, L, H), dtype=jnp.float32)

    # Conv1d(H, H, kernel_size=1) weights are (H_out, H_in, 1); drop the 1-tap.
    scale = 1.0 / jnp.sqrt(jnp.float32(H))
    w1 = jax.random.uniform(k1, (H, H), jnp.float32, -scale, scale)
    b1 = jax.random.uniform(k2, (H,), jnp.float32, -scale, scale)
    w2 = jax.random.uniform(k3, (H, H), jnp.float32, -scale, scale)
    b2 = jax.random.uniform(k4, (H,), jnp.float32, -scale, scale)

    def ref_fn(inp):
        r = jnp.maximum(jnp.einsum("blh,oh->blo", inp, w1) + b1, 0.0)
        return jnp.einsum("blh,oh->blo", r, w2) + b2 + inp

    out = jax.block_until_ready(pointwise_feedforward(x, w1, b1, w2, b2))
    assert out.shape == (B, L, H)
    assert jnp.allclose(out, ref_fn(x), atol=1e-5, rtol=1e-5)

    # Second tiny case exercising the token-padding path (N not 8-aligned).
    x2 = jax.random.normal(jax.random.PRNGKey(1), (3, 5, H), dtype=jnp.float32)
    out2 = jax.block_until_ready(pointwise_feedforward(x2, w1, b1, w2, b2))
    assert out2.shape == (3, 5, H)
    assert jnp.allclose(out2, ref_fn(x2), atol=1e-5, rtol=1e-5)

    print("KERNEL_OK")
</pallas_src>

<mosaic_0001>
module attributes {stable_mosaic.version = 11 : i64} {
  func.func @_ffn_kernel(%arg0: i32, %arg1: i32, %arg2: memref<8x32xf32, #tpu.memory_space<vmem>>, %arg3: memref<32x32xf32, #tpu.memory_space<vmem>>, %arg4: memref<1x32xf32, #tpu.memory_space<vmem>>, %arg5: memref<32x32xf32, #tpu.memory_space<vmem>>, %arg6: memref<1x32xf32, #tpu.memory_space<vmem>>, %arg7: memref<8x32xf32, #tpu.memory_space<vmem>>, %arg8: memref<8x32xf32, #tpu.memory_space<vmem>>) attributes {dimension_semantics = [#tpu.dimension_semantics<parallel>, #tpu.dimension_semantics<arbitrary>], iteration_bounds = array<i64: 2, 1>, scalar_prefetch = 0 : i64, scratch_operands = 1 : i64, tpu.core_type = #tpu.core_type<tc>, window_params = [{transform_indices = @transform_0, window_bounds = array<i64: 8, 32>}, {pipeline_mode = #tpu.pipeline_mode<synchronous>, transform_indices = @transform_1, window_bounds = array<i64: 32, 32>}, {pipeline_mode = #tpu.pipeline_mode<synchronous>, transform_indices = @transform_2, window_bounds = array<i64: 1, 32>}, {pipeline_mode = #tpu.pipeline_mode<synchronous>, transform_indices = @transform_3, window_bounds = array<i64: 32, 32>}, {pipeline_mode = #tpu.pipeline_mode<synchronous>, transform_indices = @transform_4, window_bounds = array<i64: 1, 32>}, {transform_indices = @transform_5, window_bounds = array<i64: 8, 32>}]} {
    %c0_i32 = arith.constant 0 : i32
    %0 = arith.cmpi eq, %arg1, %c0_i32 : i32
    %1 = arith.extui %0 : i1 to i32
    %c0_i32_0 = arith.constant 0 : i32
    %2 = arith.cmpi ne, %1, %c0_i32_0 : i32
    scf.if %2 {
      %cst_16 = arith.constant 0.000000e+00 : f32
      %19 = vector.broadcast %cst_16 : f32 to vector<8x32xf32>
      %c0_17 = arith.constant 0 : index
      %c0_18 = arith.constant 0 : index
      %20 = vector.load %arg8[%c0_17, %c0_18] : memref<8x32xf32, #tpu.memory_space<vmem>>, vector<8x32xf32>
      tpu.vector_store %arg8[%c0_17, %c0_18], %19 {strides = array<i32>} : memref<8x32xf32, #tpu.memory_space<vmem>>, vector<8x32xf32>,
    } else {
    }
    %c0 = arith.constant 0 : index
    %c0_1 = arith.constant 0 : index
    %3 = vector.load %arg2[%c0, %c0_1] : memref<8x32xf32, #tpu.memory_space<vmem>>, vector<8x32xf32>
    %c0_2 = arith.constant 0 : index
    %c0_3 = arith.constant 0 : index
    %4 = vector.load %arg3[%c0_2, %c0_3] : memref<32x32xf32, #tpu.memory_space<vmem>>, vector<32x32xf32>
    %cst = arith.constant dense<0.000000e+00> : vector<8x32xf32>
    %5 = tpu.matmul %3, %4, %cst {dimension_numbers = #tpu.dot_dimension_numbers<[1], [0], [0], [1], [0, 0, 1, 1], [], []>} : vector<8x32xf32>, vector<32x32xf32>, vector<8x32xf32> -> vector<8x32xf32>
    %c0_4 = arith.constant 0 : index
    %c0_5 = arith.constant 0 : index
    %6 = vector.load %arg4[%c0_4, %c0_5] : memref<1x32xf32, #tpu.memory_space<vmem>>, vector<1x32xf32>
    %7 = vector.broadcast %6 : vector<1x32xf32> to vector<8x32xf32>
    %8 = arith.addf %5, %7 : vector<8x32xf32>
    %cst_6 = arith.constant 0.000000e+00 : f32
    %9 = vector.broadcast %cst_6 : f32 to vector<8x32xf32>
    %10 = arith.maximumf %8, %9 : vector<8x32xf32>
    %c0_7 = arith.constant 0 : index
    %c0_8 = arith.constant 0 : index
    %11 = vector.load %arg8[%c0_7, %c0_8] : memref<8x32xf32, #tpu.memory_space<vmem>>, vector<8x32xf32>
    %c0_9 = arith.constant 0 : index
    %c0_10 = arith.constant 0 : index
    %12 = vector.load %arg5[%c0_9, %c0_10] : memref<32x32xf32, #tpu.memory_space<vmem>>, vector<32x32xf32>
    %cst_11 = arith.constant dense<0.000000e+00> : vector<8x32xf32>
    %13 = tpu.matmul %10, %12, %cst_11 {dimension_numbers = #tpu.dot_dimension_numbers<[1], [0], [0], [1], [0, 0, 1, 1], [], []>} : vector<8x32xf32>, vector<32x32xf32>, vector<8x32xf32> -> vector<8x32xf32>
    %14 = arith.addf %11, %13 : vector<8x32xf32>
    %c0_12 = arith.constant 0 : index
    %c0_13 = arith.constant 0 : index
    %15 = vector.load %arg8[%c0_12, %c0_13] : memref<8x32xf32, #tpu.memory_space<vmem>>, vector<8x32xf32>
    tpu.vector_store %arg8[%c0_12, %c0_13], %14 {strides = array<i32>} : memref<8x32xf32, #tpu.memory_space<vmem>>, vector<8x32xf32>,
    %c0_i32_14 = arith.constant 0 : i32
    %16 = arith.cmpi eq, %arg1, %c0_i32_14 : i32
    %17 = arith.extui %16 : i1 to i32
    %c0_i32_15 = arith.constant 0 : i32
    %18 = arith.cmpi ne, %17, %c0_i32_15 : i32
    scf.if %18 {
      %c0_16 = arith.constant 0 : index
      %c0_17 = arith.constant 0 : index
      %19 = vector.load %arg8[%c0_16, %c0_17] : memref<8x32xf32, #tpu.memory_space<vmem>>, vector<8x32xf32>
      %c0_18 = arith.constant 0 : index
      %c0_19 = arith.constant 0 : index
      %20 = vector.load %arg6[%c0_18, %c0_19] : memref<1x32xf32, #tpu.memory_space<vmem>>, vector<1x32xf32>
      %21 = vector.broadcast %20 : vector<1x32xf32> to vector<8x32xf32>
      %22 = arith.addf %19, %21 : vector<8x32xf32>
      %23 = arith.addf %22, %3 : vector<8x32xf32>
      %c0_20 = arith.constant 0 : index
      %c0_21 = arith.constant 0 : index
      %24 = vector.load %arg7[%c0_20, %c0_21] : memref<8x32xf32, #tpu.memory_space<vmem>>, vector<8x32xf32>
      tpu.vector_store %arg7[%c0_20, %c0_21], %23 {strides = array<i32>} : memref<8x32xf32, #tpu.memory_space<vmem>>, vector<8x32xf32>,
    } else {
    }
    return
  }
  func.func @transform_0(%arg0: i32, %arg1: i32) -> (i32, i32) {
    %c0_i32 = arith.constant 0 : i32
    %c0_i32_0 = arith.constant 0 : i32
    return %arg0, %c0_i32 : i32, i32
  }
  func.func @transform_1(%arg0: i32, %arg1: i32) -> (i32, i32) {
    %c0_i32 = arith.constant 0 : i32
    %c0_i32_0 = arith.constant 0 : i32
    return %c0_i32, %arg1 : i32, i32
  }
  func.func @transform_2(%arg0: i32, %arg1: i32) -> (i32, i32) {
    %c0_i32 = arith.constant 0 : i32
    %c0_i32_0 = arith.constant 0 : i32
    return %c0_i32, %arg1 : i32, i32
  }
  func.func @transform_3(%arg0: i32, %arg1: i32) -> (i32, i32) {
    %c0_i32 = arith.constant 0 : i32
    %c0_i32_0 = arith.constant 0 : i32
    return %arg1, %c0_i32 : i32, i32
  }
  func.func @transform_4(%arg0: i32, %arg1: i32) -> (i32, i32) {
    %c0_i32 = arith.constant 0 : i32
    %c0_i32_0 = arith.constant 0 : i32
    %c0_i32_1 = arith.constant 0 : i32
    return %c0_i32, %c0_i32_0 : i32, i32
  }
  func.func @transform_5(%arg0: i32, %arg1: i32) -> (i32, i32) {
    %c0_i32 = arith.constant 0 : i32
    %c0_i32_0 = arith.constant 0 : i32
    return %arg0, %c0_i32 : i32, i32
  }
}

</mosaic_0001>

<bundles_post_ra>
// kernel: pointwise_feedforward.1
= control target key start
LH: loop header
LB: loop body
LE: loop exit
PB: predicated region body
PF: predicated region fallthrough
CT: control target
= control target key end

     0   :  { %10 = vsyncpa [#allocation4], 0  ;;  %s976_s0 = inlined_call_operand.vmem [shape: f32[16,32], index: 0, kind: input, shape index: {}]   ;;  %s977_s1 = inlined_call_operand.vmem [shape: f32[32,32], index: 1, kind: input, shape index: {}]   ;;  %s978_s2 = inlined_call_operand.vmem [shape: f32[1,32], index: 2, kind: input, shape index: {}]   ;;  %s979_s3 = inlined_call_operand.vmem [shape: f32[32,32], index: 3, kind: input, shape index: {}]   ;;  %s980_s4 = inlined_call_operand.vmem [shape: f32[1,32], index: 4, kind: input, shape index: {}]   ;;  %s981_s5 = inlined_call_operand.hbm [shape: f32[16,32], index: 5, kind: output, shape index: {}]  }
   0x1   :  { %12 = vsyncpa [#allocation4 + $0x1], 0  ;;  %s829_s18 = smov 0   ;;  %s831_s19 = smov 0  }
   0x2   :  { %s833_s20 = smov 0   ;;  %s835_s21 = smov 0  }
   0x3   :  { %s837_s22 = smov 0   ;;  %s839_s23 = smov 0  }
   0x4 LB: > { %s595_s24 = sadd.s32 4294967295, %s793_s23   ;;  %s596_s25 = sadd.s32 4294967294, %s793_s23   ;;  %s793_s23 = sphi %s839_s23, %s18_s23   ;;  %s789_s22 = sphi %s837_s22, %s988_s22   ;;  %s785_s21 = sphi %s835_s21, %s987_s21   ;;  %s781_s20 = sphi %s833_s20, %s986_s20   ;;  %s777_s19 = sphi %s831_s19, %s985_s19   ;;  %s773_s18 = sphi %s829_s18, %s984_s18  }
   0x5   : > { %s30_s26 = sadd.s32 1, %s789_s22  ;;  %s162_s27 = sadd.s32 1, %s781_s20 }
   0x6   : > { %p32_p0 = scmp.ge.s32.totalorder %s30_s26, 2  ;;  %p172_p1 = scmp.ne.s32.totalorder %s781_s20, %s777_s19 }
   0x7   : > { %p173_p2 = scmp.eq.s32.totalorder %s595_s24, 1  ;;  %p178_p3 = scmp.ne.s32.totalorder %s777_s19, %s773_s18 }
   0x8   : > { %s990_s26 = smov (%p32_p0, %s30_s26), 0  ;;  %p179_p5 = scmp.eq.s32.totalorder %s596_s25, 1 }
   0x9   : > { %p869_p4 = por %p173_p2, %p172_p1  ;;  %s159_s29 = ssub.s32 %s789_s22, %s990_s26 }
   0xa   : > { %p602_p6 = scmp.ge.s32.totalorder %s793_s23, 1  ;;  %p160_p7 = scmp.eq.s32.totalorder %s159_s29, 0 }
   0xb   : > { %p876_p8 = por %p179_p5, %p178_p3  ;;  %p229_p9 = scmp.lt.s32.totalorder %s793_s23, 3 }
   0xc   : > { %s882_s6 = scalar_select %p160_p7, %s781_s20, %s162_s27  }
   0xd   : > { %p230_p10 = pnand %p602_p6, %p229_p9 }
   0xe   : > { %v292_v0 = vld [vmem:[%s977_s1] sm:$0xff] (!%p230_p10)  ;;  %v293_v1 = vld [vmem:[%s977_s1 + $0x8] sm:$0xff] (!%p230_p10)  ;;  %v294_v2 = vld [vmem:[%s977_s1 + $0x10] sm:$0xff] (!%p230_p10)  ;;  %vm289_vm0 = vcmask (!%p230_p10), 261120   ;;  %v795_v3 = vmov (!%p230_p10), 0.0|0.0   ;;  %v796_v6 = vmov (!%p230_p10), 0.0  }
   0xf   : > { %233 = sbr.rel (%p230_p10) target bundleno = 483 (0x1e3), region = 40  ;;  %645 = vmatprep.subr.bf16.mxu0 (!%p230_p10), %v795_v3  ;;  %v646_v4 = vpack.c.bf16 (!%p230_p10), %v293_v1, %v292_v0  ;;  %v295_v5 = vld [vmem:[%s977_s1 + $0x18] sm:$0xff] (!%p230_p10)  ;;  %290 = vst.msk [vmem:[#allocation2] sm:$0xff] (!%p230_p10), %vm289_vm0, %v796_v6  ;;  %p268_p11 = scmp.lt.s32.totalorder (!%p230_p10), %s785_s21, 1  ;;  %651 = vmatprep.subr.bf16.mxu1 (!%p230_p10), %v795_v3  ;;  %v379_v7 = vld [vmem:[%s979_s3] sm:$0xff] (!%p230_p10)  ;;  %v380_v8 = vld [vmem:[%s979_s3 + $0x8] sm:$0xff] (!%p230_p10) }
  0x10   : > { %vm797_vm1 = vmmov (!%p230_p10), 0   ;;  %v652_v9 = vpack.c.bf16 (!%p230_p10), %v380_v8, %v379_v7  ;;  %v649_v10 = vpack.c.bf16 (!%p230_p10), %v295_v5, %v294_v2  ;;  %v381_v12 = vld [vmem:[%s979_s3 + $0x10] sm:$0xff] (!%p230_p10)  ;;  %v382_v13 = vld [vmem:[%s979_s3 + $0x18] sm:$0xff] (!%p230_p10)  ;;  %v605_v15 = vld [vmem:[%s978_s2] ss:$0 sm:$0xff] (!%p230_p10)  ;;  %s265_s15 = sand.u32 (!%p230_p10), 1, %s777_s19  }
  0x11   : > { %631 = vmatprep.mubr.msk.f32.mxu0 (!%p230_p10), %vm797_vm1, %v796_v6  ;;  %642 = vmatprep.mubr.msk.f32.mxu1 (!%p230_p10), %vm797_vm1, %v796_v6  ;;  %v655_v14 = vpack.c.bf16 (!%p230_p10), %v382_v13, %v381_v12  ;;  %s603_s16 = sshll.u32 (!%p230_p10), %s265_s15, 3  ;;  %v608_v24 = vld [vmem:[%s980_s4] ss:$0 sm:$0xff] (!%p230_p10)  ;;  %s473_s10 = scalar_lea.sflag (!%p230_p10), [#allocation4], %s265_s15 }
  0x12   : > { %647 = vmatpush3.bf16.msra.mxu0 (!%p230_p10), %v646_v4  ;;  %653 = vmatpush3.bf16.msra.mxu1 (!%p230_p10), %v652_v9 }
  0x13   : > { %648 = vmatprep.subr.bf16.mxu0 (!%p230_p10), %v795_v3  ;;  %654 = vmatprep.subr.bf16.mxu1 (!%p230_p10), %v795_v3 }
  0x16   : > { %s269_s25 = scalar_select %p268_p11, %s785_s21, 1  ;;  %650 = vmatpush3.bf16.msra.mxu0 %v649_v10  ;;  %656 = vmatpush3.bf16.msra.mxu1 %v655_v14  ;;  %v378_v20 = vld [vmem:[#allocation2] sm:$0xff] }
  0x18   : > { %s604_s27 = sshll.u32 %s269_s25, 3  ;;  %s610_s25 = sshll.u32 %s785_s21, 7 }
  0x19   : > { %s271_s8 = scalar_lea.vmem %s976_s0, %s604_s27  ;;  %s267_s27 = scalar_lea.vmem [#allocation3], %s603_s16 }
  0x1a   : > { %v291_v11 = vld [vmem:[%s271_s8] sm:$0xff]  ;;  %s486_s29 = sshll.u32 %s267_s27, 4  ;;  %s928_s9 = scalar_lea.hbm %s981_s5, %s610_s25  ;;  %s930_s29 = int_to_ptr.vmem [resolvable:$true] %s486_s29 }
  0x1b   : > { %632 = vmatmul.mubr.msk.f32.vlgmr.msra.gmra.mrb[0].mxu0 %vm289_vm0, %v291_v11  ;;  %s715_s11 = scalar_lea.vmem %s930_s29, 128  ;;  %s798_s21 = smov [#allocation3]  }
  0x1c   : > { %p716_p12 = scmp.ne.s32.totalorder %s930_s29, %s715_s11  ;;  %s719_s12 = sshll.u32 %s798_s21, 4  ;;  %s720_s12 = int_to_ptr.vmem [resolvable:$false] %s719_s12 }
  0x1d   : > { %s721_s13 = scalar_lea.vmem %s720_s12, 256  ;;  %p722_p1 = scmp.lt.s32.totalorder %s930_s29, %s720_s12 }
  0x1e   : > { %p717_p13 = pnand %p716_p12, %p869_p4  ;;  %p723_p2 = scmp.lt.s32.totalorder %s721_s13, %s715_s11 }
  0x20   : > { %p718_p0 = pneg %p717_p13  ;;  %p724_p3 = por %p723_p2, %p722_p1 }
  0x22   : > { %p725_p5 = pnand %p724_p3, %p718_p0 }
  0xee   : > { %v373_v16 = vpop.f32.mrb[0].mxu0 }
  0xef   : > { %v374_v17 = vadd.f32 %v605_v15, %v373_v16  ;;  %v633_v18 = vpop.f32.mrb[1].mxu0 }
  0xf1   : > { %v377_v19 = vmax.f32 %v374_v17, 0.0 }
  0xf3   : > { %643 = vmatmul.mubr.msk.f32.vlgmr.msra.gmra.mrb[0].mxu1 %vm289_vm0, %v377_v19 }
 0x1c6   : > { %v452_v21 = vpop.f32.mrb[0].mxu1 }
 0x1c7   : > { %v456_v22 = vadd.f32 %v452_v21, %v378_v20  ;;  %v644_v23 = vpop.f32.mrb[1].mxu1 }
 0x1c9   : > { %457 = vst.msk [vmem:[#allocation2] sm:$0xff] %vm289_vm0, %v456_v22 }
 0x1d0   : > { %v461_v25 = vld [vmem:[#allocation2] sm:$0xff] }
 0x1d1   : > { %v469_v26 = vadd.f32 %v608_v24, %v461_v25 }
 0x1d3   : > { %v470_v27 = vadd.f32 %v469_v26, %v291_v11 }
 0x1d5   : > { %471 = vst.msk [vmem:[%s267_s27] sm:$0xff] %vm289_vm0, %v470_v27 }
 0x1d6   : > { %728 = shalt.err (!%p725_p5)
}
 0x1d7   : > { %s729_s14 = scalar_lea.hbm %s928_s9, 128  ;;  %s733_s17 = scalar_lea.hbm %s981_s5, 256 }
 0x1d8   : > { %p730_p6 = scmp.ne.s32.totalorder %s928_s9, %s729_s14  ;;  %p734_p10 = scmp.lt.u32.totalorder %s928_s9, %s981_s5 }
 0x1d9   : > { %p735_p11 = scmp.lt.u32.totalorder %s733_s17, %s729_s14  ;;  %p737_p13 = scmp.lt.u32.totalorder %s729_s14, %s928_s9 }
 0x1da   : > { %p731_p7 = pnand %p730_p6, %p869_p4 }
 0x1db   : > { %p736_p12 = por %p735_p11, %p734_p10 }
 0x1dc   : > { %p732_p9 = pneg %p731_p7 }
 0x1dd   : > { %p738_p0 = por %p737_p13, %p736_p12 }
 0x1df   : > { %p739_p1 = pnand %p738_p0, %p732_p9 }
 0x1e1   : > { %742 = shalt.err (!%p739_p1)
}
 0x1e2   : > { %657 = dma.vmem_to_hbm [thread:$0]  (%p869_p4), %s930_s29, 128, %s928_s9, %s473_s10  }
 0x1e3 PF: > { %p663_p2 = scmp.ge.s32.totalorder %s793_s23, 2  ;;  %s498_s27 = sand.u32 1, %s773_s18  }
 0x1e4   : > { %s499_s7 = scalar_lea.sflag [#allocation4], %s498_s27 }
 0x1e5   : > { %p660_p3 = pnand %p663_p2, %p876_p8 }
 0x1e7   : > { %768 = dma.done.wait (!%p660_p3), %s499_s7, 128  }
 0x1e8   : > { %770 = vsyncadd (!%p660_p3), %s499_s7, 4294967168  ;;  %s18_s23 = sadd.s32 1, %s793_s23   ;;  %s984_s18 = smov %s777_s19 }
 0x1e9   : > { %p15_p5 = scmp.ge.s32.totalorder %s18_s23, 4   ;;  %s985_s19 = smov %s781_s20 }
 0x1ea   : > { %s986_s20 = smov %s882_s6  ;;  %s987_s21 = smov %s789_s22 }
 0x1eb   : > { %s988_s22 = smov %s990_s26  ;;  %17 = sbr.rel (!%p15_p5) target bundleno = 4 (0x4), region = 92 }
 0x1f2   :  { %504 = vsyncpa [#allocation4], 1 }
 0x1f3   :  { %506 = vsyncpa [#allocation4 + $0x1], 1 }

</bundles_post_ra>
